<compile_context>
chip_gen: v7x
topology: tpu7x:2x2x1
jax: 0.10.0
libtpu: 0.0.40
codegen_flags: <defaults>
</compile_context>

<pallas_src>
import functools

import jax
import jax.numpy as jnp
from jax import lax
from jax.experimental import pallas as pl
from jax.experimental.pallas import tpu as pltpu


# ------------------------------------------------------------------ fused kernel
def _attention_pool_kernel(x_ref, pos0_ref, poss_ref,
                           wq_ref, wk_ref, wv_ref, wc_ref,
                           bq_ref, bk_ref, bv_ref, bc_ref,
                           o_ref, *, num_heads, hw, scale):
    f32 = jnp.float32
    cdt = wq_ref.dtype                       # bf16 -> MXU operand dtype
    B, P, C = x_ref.shape                    # B_tile, HW_pad, embed_dim
    nh = num_heads
    D = C // nh
    BP = B * P

    # ---- head membership one-hots, generated in-kernel (exact in bf16, no int div) ----
    ch = lax.broadcasted_iota(jnp.int32, (C, nh), 0)
    hd = lax.broadcasted_iota(jnp.int32, (C, nh), 1) * D
    hmap = ((ch >= hd) & (ch < hd + D)).astype(cdt)            # (C, nh)
    ch_t = lax.broadcasted_iota(jnp.int32, (nh, C), 1)
    hd_t = lax.broadcasted_iota(jnp.int32, (nh, C), 0) * D
    hmapt = ((ch_t >= hd_t) & (ch_t < hd_t + D)).astype(cdt)   # (nh, C)

    # ---- token build: f32 mean + positional add (pad rows of x / poss are zero) ----
    x3 = x_ref[...].astype(f32)                                # (B, P, C)
    tok_s = x3 + poss_ref[...][None]                           # (B, P, C) spatial tokens
    m_tok = jnp.sum(x3, axis=1) * (1.0 / hw) + pos0_ref[...]   # (B, C)    mean/query token

    tok_s_b = tok_s.astype(cdt).reshape(BP, C)                 # aligned -> free reshape
    m_b = m_tok.astype(cdt)                                    # (B, C)
    tok_all = jnp.concatenate([tok_s_b, m_b], axis=0)          # (BP + B, C) fused K/V input

    # ---- projections: ONE weight pass each for K and V over all rows; f32 accumulate ----
    k_all = jnp.dot(tok_all, wk_ref[...], preferred_element_type=f32) + bk_ref[...]
    v_all = jnp.dot(tok_all, wv_ref[...], preferred_element_type=f32) + bv_ref[...]
    q = (jnp.dot(m_b, wq_ref[...], preferred_element_type=f32) + bq_ref[...]) * scale  # (B, C)

    k_s = k_all[:BP].reshape(B, P, C)
    k_m = k_all[BP:]                                           # (B, C)
    v_s = v_all[:BP].reshape(B, P, C)
    v_m = v_all[BP:]                                           # (B, C)

    # ---- single-query multi-head attention (lane-dense head trick, bf16 MXU operands) ----
    e_s = (k_s * q[:, None, :]).astype(cdt)                    # (B, P, C)
    e_m = (k_m * q).astype(cdt)                                # (B, C)
    s_sp = jnp.dot(e_s.reshape(BP, C), hmap,
                   preferred_element_type=f32).reshape(B, P, nh)      # per-head scores
    s_mn = jnp.dot(e_m, hmap, preferred_element_type=f32)             # (B, nh)

    ridx = lax.broadcasted_iota(jnp.int32, (B, P, nh), 1)
    s_sp = jnp.where(ridx < hw, s_sp, f32(-1e30))              # mask spatial pad rows

    m_max = jnp.maximum(jnp.max(s_sp, axis=1), s_mn)           # (B, nh)
    p_sp = jnp.exp(s_sp - m_max[:, None, :])                   # (B, P, nh)
    p_mn = jnp.exp(s_mn - m_max)                               # (B, nh)
    denom = p_mn + jnp.sum(p_sp, axis=1)                       # (B, nh)
    inv = pl.reciprocal(denom, approx=True)                    # EUP, nh values per batch

    pn_sp = (p_sp * inv[:, None, :]).astype(cdt)
    pn_mn = (p_mn * inv).astype(cdt)
    pc_sp = jnp.dot(pn_sp.reshape(BP, nh), hmapt,
                    preferred_element_type=f32).reshape(B, P, C)       # probs -> channels
    pc_mn = jnp.dot(pn_mn, hmapt, preferred_element_type=f32)          # (B, C)

    attn = jnp.sum(pc_sp * v_s, axis=1) + pc_mn * v_m          # (B, C) f32

    # ---- output projection (c_proj) ----
    out = jnp.dot(attn.astype(cdt), wc_ref[...], preferred_element_type=f32) + bc_ref[...]
    o_ref[...] = out.astype(o_ref.dtype)


# ------------------------------------------------------------------ helpers
def _vmem_limit_bytes():
    """Per-generation VMEM limit: ~7/8 of physical (56 MiB v7x, 112 MiB v5e/v6e)."""
    try:
        cap = int(pltpu.get_tpu_info().vmem_capacity_bytes)
        return int(min(cap - (8 << 20), (cap * 7) // 8))
    except Exception:
        return 48 * 1024 * 1024


# ------------------------------------------------------------------ wrapper
def attention_pool2d(x, params, num_heads):
    N, C, H, W = x.shape
    HW = H * W
    assert C % num_heads == 0
    D = C // num_heads
    Dout = params["c_w"].shape[0]
    scale = float(D) ** -0.5
    f32, bf16 = jnp.float32, jnp.bfloat16

    # Pad spatial rows to a multiple of 8 so per-batch chunks are sublane-aligned.
    HW_pad = -(-HW // 8) * 8

    # Batch tile: target M = B_tile*(HW_pad+1) >= 256 rows per K/V weight pass.
    if N <= 8:
        B_tile = N
    else:
        B_tile = 8 * max(1, -(-256 // (8 * (HW_pad + 1))))
        B_tile = min(B_tile, 32)
    N_pad = -(-N // B_tile) * B_tile

    # Single XLA-side layout change; stream activations in bf16 (halves HBM traffic).
    x_t = jnp.transpose(x.reshape(N, C, HW), (0, 2, 1)).astype(bf16)
    x_t = jnp.pad(x_t, ((0, N_pad - N), (0, HW_pad - HW), (0, 0)))

    pos = params["pos"].astype(f32)
    pos0 = pos[:1]                                              # (1, C)
    poss = jnp.pad(pos[1:], ((0, HW_pad - HW), (0, 0)))         # (HW_pad, C), pad rows zero

    # bf16 weights (resident MXU operands), f32 biases (added after f32 accumulation).
    wq = params["q_w"].T.astype(bf16)
    wk = params["k_w"].T.astype(bf16)
    wv = params["v_w"].T.astype(bf16)
    wc = params["c_w"].T.astype(bf16)                           # (C, Dout)
    bq = params["q_b"].reshape(1, C).astype(f32)
    bk = params["k_b"].reshape(1, C).astype(f32)
    bv = params["v_b"].reshape(1, C).astype(f32)
    bc = params["c_b"].reshape(1, Dout).astype(f32)

    def resident(shape):
        """Constant-block resident operand; single-buffered (no 2x VMEM)."""
        idx = lambda i: (0,) * len(shape)
        try:
            return pl.BlockSpec(shape, idx, pipeline_mode=pl.Buffered(1))
        except Exception:
            return pl.BlockSpec(shape, idx)

    kern = functools.partial(_attention_pool_kernel,
                             num_heads=num_heads, hw=HW, scale=scale)
    out = pl.pallas_call(
        kern,
        grid=(N_pad // B_tile,),
        out_shape=jax.ShapeDtypeStruct((N_pad, Dout), f32),
        in_specs=[
            pl.BlockSpec((B_tile, HW_pad, C), lambda i: (i, 0, 0)),  # streamed activations
            resident((1, C)),            # pos[0]
            resident((HW_pad, C)),       # pos[1:]
            resident((C, C)),            # Wq^T
            resident((C, C)),            # Wk^T
            resident((C, C)),            # Wv^T
            resident((C, Dout)),         # Wc^T
            resident((1, C)),            # bq
            resident((1, C)),            # bk
            resident((1, C)),            # bv
            resident((1, Dout)),         # bc
        ],
        out_specs=pl.BlockSpec((B_tile, Dout), lambda i: (i, 0)),    # lane-dense 2-D slab
        compiler_params=pltpu.CompilerParams(
            dimension_semantics=("parallel",),
            vmem_limit_bytes=_vmem_limit_bytes(),
        ),
    )(x_t, pos0, poss, wq, wk, wv, wc, bq, bk, bv, bc)
    return out[:N]


# ------------------------------------------------------------------ pure-JAX reference
def attention_pool2d_reference(x, params, num_heads):
    """Full multi-head attention over all L tokens (like torch), then take token 0.

    Uses bf16-rounded weights and bf16-rounded input (the kernel streams x in bf16) so the
    comparison isolates kernel math (f32 stats, approx reciprocal, bf16 MXU operands)."""
    N, C, H, W = x.shape
    HW = H * W
    L = HW + 1
    D = C // num_heads
    r = lambda a: a.astype(jnp.bfloat16).astype(jnp.float32)

    xt = r(jnp.transpose(x.reshape(N, C, HW), (0, 2, 1)))                # (N, HW, C)
    tok = jnp.concatenate([xt.mean(axis=1, keepdims=True), xt], axis=1)  # (N, L, C)
    tok = tok + params["pos"][None]

    q = (tok @ r(params["q_w"]).T + params["q_b"]) * (float(D) ** -0.5)
    k = tok @ r(params["k_w"]).T + params["k_b"]
    v = tok @ r(params["v_w"]).T + params["v_b"]

    def split(t):  # (N, L, C) -> (N, nh, L, D)
        return t.reshape(N, L, num_heads, D).transpose(0, 2, 1, 3)

    qh, kh, vh = split(q), split(k), split(v)
    s = jnp.einsum("nhqd,nhkd->nhqk", qh, kh)
    p = jax.nn.softmax(s, axis=-1)
    o = jnp.einsum("nhqk,nhkd->nhqd", p, vh)
    o = o.transpose(0, 2, 1, 3).reshape(N, L, C)
    out = o @ r(params["c_w"]).T + params["c_b"]
    return out[:, 0]


# ------------------------------------------------------------------ param init
def init_params(key, spacial_dim, embed_dim, output_dim):
    ks = jax.random.split(key, 9)
    std = embed_dim ** -0.5

    def lin(kw, kb, out_d, in_d):
        w = (std * jax.random.normal(kw, (out_d, in_d))).astype(jnp.float32)
        b = (0.1 * jax.random.normal(kb, (out_d,))).astype(jnp.float32)
        return w, b

    q_w, q_b = lin(ks[0], ks[1], embed_dim, embed_dim)
    k_w, k_b = lin(ks[2], ks[3], embed_dim, embed_dim)
    v_w, v_b = lin(ks[4], ks[5], embed_dim, embed_dim)
    c_w, c_b = lin(ks[6], ks[7], output_dim, embed_dim)
    pos = (std * jax.random.normal(ks[8], (spacial_dim ** 2 + 1, embed_dim))).astype(jnp.float32)
    return dict(pos=pos, q_w=q_w, q_b=q_b, k_w=k_w, k_b=k_b,
                v_w=v_w, v_b=v_b, c_w=c_w, c_b=c_b)


if __name__ == "__main__":
    spacial_dim, embed_dim, num_heads, output_dim = 4, 32, 4, 64
    batch = 2

    key = jax.random.PRNGKey(0)
    params = init_params(key, spacial_dim, embed_dim, output_dim)
    x = jax.random.normal(jax.random.fold_in(key, 123),
                          (batch, embed_dim, spacial_dim, spacial_dim), jnp.float32)

    out = jax.block_until_ready(attention_pool2d(x, params, num_heads))
    assert out.shape == (batch, output_dim)
    assert bool(jnp.all(jnp.isfinite(out)))

    ref = jax.block_until_ready(attention_pool2d_reference(x, params, num_heads))
    assert bool(jnp.allclose(out, ref, rtol=1e-1, atol=5e-2)), float(jnp.max(jnp.abs(out - ref)))

    print("KERNEL_OK")
</pallas_src>

<mosaic_0001>
module attributes {stable_mosaic.version = 11 : i64} {
  func.func @_attention_pool_kernel(%arg0: i32, %arg1: memref<2x16x32xbf16, #tpu.memory_space<vmem>>, %arg2: memref<1x32xf32, #tpu.memory_space<vmem>>, %arg3: memref<16x32xf32, #tpu.memory_space<vmem>>, %arg4: memref<32x32xbf16, #tpu.memory_space<vmem>>, %arg5: memref<32x32xbf16, #tpu.memory_space<vmem>>, %arg6: memref<32x32xbf16, #tpu.memory_space<vmem>>, %arg7: memref<32x64xbf16, #tpu.memory_space<vmem>>, %arg8: memref<1x32xf32, #tpu.memory_space<vmem>>, %arg9: memref<1x32xf32, #tpu.memory_space<vmem>>, %arg10: memref<1x32xf32, #tpu.memory_space<vmem>>, %arg11: memref<1x64xf32, #tpu.memory_space<vmem>>, %arg12: memref<2x64xf32, #tpu.memory_space<vmem>>) attributes {dimension_semantics = [#tpu.dimension_semantics<parallel>], iteration_bounds = array<i64: 1>, scalar_prefetch = 0 : i64, scratch_operands = 0 : i64, tpu.core_type = #tpu.core_type<tc>, window_params = [{transform_indices = @transform_0, window_bounds = array<i64: 2, 16, 32>}, {pipeline_mode = #tpu.pipeline_mode<synchronous>, transform_indices = @transform_1, window_bounds = array<i64: 1, 32>}, {pipeline_mode = #tpu.pipeline_mode<synchronous>, transform_indices = @transform_2, window_bounds = array<i64: 16, 32>}, {pipeline_mode = #tpu.pipeline_mode<synchronous>, transform_indices = @transform_3, window_bounds = array<i64: 32, 32>}, {pipeline_mode = #tpu.pipeline_mode<synchronous>, transform_indices = @transform_4, window_bounds = array<i64: 32, 32>}, {pipeline_mode = #tpu.pipeline_mode<synchronous>, transform_indices = @transform_5, window_bounds = array<i64: 32, 32>}, {pipeline_mode = #tpu.pipeline_mode<synchronous>, transform_indices = @transform_6, window_bounds = array<i64: 32, 64>}, {pipeline_mode = #tpu.pipeline_mode<synchronous>, transform_indices = @transform_7, window_bounds = array<i64: 1, 32>}, {pipeline_mode = #tpu.pipeline_mode<synchronous>, transform_indices = @transform_8, window_bounds = array<i64: 1, 32>}, {pipeline_mode = #tpu.pipeline_mode<synchronous>, transform_indices = @transform_9, window_bounds = array<i64: 1, 32>}, {pipeline_mode = #tpu.pipeline_mode<synchronous>, transform_indices = @transform_10, window_bounds = array<i64: 1, 64>}, {transform_indices = @transform_11, window_bounds = array<i64: 2, 64>}]} {
    %0 = tpu.iota {dimensions = array<i32: 0>} : vector<32x4xi32>
    %1 = tpu.iota {dimensions = array<i32: 1>} : vector<32x4xi32>
    %c8_i32 = arith.constant 8 : i32
    %2 = vector.broadcast %c8_i32 : i32 to vector<32x4xi32>
    %3 = arith.muli %1, %2 : vector<32x4xi32>
    %4 = arith.cmpi sge, %0, %3 : vector<32x4xi32>
    %c8_i32_0 = arith.constant 8 : i32
    %5 = vector.broadcast %c8_i32_0 : i32 to vector<32x4xi32>
    %6 = arith.addi %3, %5 : vector<32x4xi32>
    %7 = arith.cmpi slt, %0, %6 : vector<32x4xi32>
    %8 = arith.andi %4, %7 : vector<32x4xi1>
    %9 = arith.extui %8 : vector<32x4xi1> to vector<32x4xi32>
    %10 = arith.sitofp %9 : vector<32x4xi32> to vector<32x4xf32>
    %11 = arith.truncf %10 : vector<32x4xf32> to vector<32x4xbf16>
    %12 = tpu.iota {dimensions = array<i32: 1>} : vector<4x32xi32>
    %13 = tpu.iota {dimensions = array<i32: 0>} : vector<4x32xi32>
    %c8_i32_1 = arith.constant 8 : i32
    %14 = vector.broadcast %c8_i32_1 : i32 to vector<4x32xi32>
    %15 = arith.muli %13, %14 : vector<4x32xi32>
    %16 = arith.cmpi sge, %12, %15 : vector<4x32xi32>
    %c8_i32_2 = arith.constant 8 : i32
    %17 = vector.broadcast %c8_i32_2 : i32 to vector<4x32xi32>
    %18 = arith.addi %15, %17 : vector<4x32xi32>
    %19 = arith.cmpi slt, %12, %18 : vector<4x32xi32>
    %20 = arith.andi %16, %19 : vector<4x32xi1>
    %21 = arith.extui %20 : vector<4x32xi1> to vector<4x32xi32>
    %22 = arith.sitofp %21 : vector<4x32xi32> to vector<4x32xf32>
    %23 = arith.truncf %22 : vector<4x32xf32> to vector<4x32xbf16>
    %c0 = arith.constant 0 : index
    %c0_3 = arith.constant 0 : index
    %c0_4 = arith.constant 0 : index
    %24 = vector.load %arg1[%c0, %c0_3, %c0_4] : memref<2x16x32xbf16, #tpu.memory_space<vmem>>, vector<2x16x32xbf16>
    %25 = arith.extf %24 : vector<2x16x32xbf16> to vector<2x16x32xf32>
    %c0_5 = arith.constant 0 : index
    %c0_6 = arith.constant 0 : index
    %26 = vector.load %arg3[%c0_5, %c0_6] : memref<16x32xf32, #tpu.memory_space<vmem>>, vector<16x32xf32>
    %27 = vector.shape_cast %26 : vector<16x32xf32> to vector<1x16x32xf32>
    %28 = vector.broadcast %27 : vector<1x16x32xf32> to vector<2x16x32xf32>
    %29 = arith.addf %25, %28 : vector<2x16x32xf32>
    %cst = arith.constant dense<0.000000e+00> : vector<2x32xf32>
    %30 = vector.multi_reduction <add>, %25, %cst [1] : vector<2x16x32xf32> to vector<2x32xf32>
    %cst_7 = arith.constant 6.250000e-02 : f32
    %31 = vector.broadcast %cst_7 : f32 to vector<2x32xf32>
    %32 = arith.mulf %30, %31 : vector<2x32xf32>
    %c0_8 = arith.constant 0 : index
    %c0_9 = arith.constant 0 : index
    %33 = vector.load %arg2[%c0_8, %c0_9] : memref<1x32xf32, #tpu.memory_space<vmem>>, vector<1x32xf32>
    %34 = vector.broadcast %33 : vector<1x32xf32> to vector<2x32xf32>
    %35 = arith.addf %32, %34 : vector<2x32xf32>
    %36 = arith.truncf %29 : vector<2x16x32xf32> to vector<2x16x32xbf16>
    %37 = vector.shape_cast %36 : vector<2x16x32xbf16> to vector<32x32xbf16>
    %38 = arith.truncf %35 : vector<2x32xf32> to vector<2x32xbf16>
    %39 = tpu.concatenate %37, %38 in 0 : vector<32x32xbf16>, vector<2x32xbf16> -> vector<34x32xbf16>
    %c0_10 = arith.constant 0 : index
    %c0_11 = arith.constant 0 : index
    %40 = vector.load %arg5[%c0_10, %c0_11] : memref<32x32xbf16, #tpu.memory_space<vmem>>, vector<32x32xbf16>
    %cst_12 = arith.constant dense<0.000000e+00> : vector<34x32xf32>
    %41 = tpu.matmul %39, %40, %cst_12 {dimension_numbers = #tpu.dot_dimension_numbers<[1], [0], [0], [1], [0, 0, 1, 1], [], []>} : vector<34x32xbf16>, vector<32x32xbf16>, vector<34x32xf32> -> vector<34x32xf32>
    %c0_13 = arith.constant 0 : index
    %c0_14 = arith.constant 0 : index
    %42 = vector.load %arg9[%c0_13, %c0_14] : memref<1x32xf32, #tpu.memory_space<vmem>>, vector<1x32xf32>
    %43 = vector.broadcast %42 : vector<1x32xf32> to vector<34x32xf32>
    %44 = arith.addf %41, %43 : vector<34x32xf32>
    %c0_15 = arith.constant 0 : index
    %c0_16 = arith.constant 0 : index
    %45 = vector.load %arg6[%c0_15, %c0_16] : memref<32x32xbf16, #tpu.memory_space<vmem>>, vector<32x32xbf16>
    %cst_17 = arith.constant dense<0.000000e+00> : vector<34x32xf32>
    %46 = tpu.matmul %39, %45, %cst_17 {dimension_numbers = #tpu.dot_dimension_numbers<[1], [0], [0], [1], [0, 0, 1, 1], [], []>} : vector<34x32xbf16>, vector<32x32xbf16>, vector<34x32xf32> -> vector<34x32xf32>
    %c0_18 = arith.constant 0 : index
    %c0_19 = arith.constant 0 : index
    %47 = vector.load %arg10[%c0_18, %c0_19] : memref<1x32xf32, #tpu.memory_space<vmem>>, vector<1x32xf32>
    %48 = vector.broadcast %47 : vector<1x32xf32> to vector<34x32xf32>
    %49 = arith.addf %46, %48 : vector<34x32xf32>
    %c0_20 = arith.constant 0 : index
    %c0_21 = arith.constant 0 : index
    %50 = vector.load %arg4[%c0_20, %c0_21] : memref<32x32xbf16, #tpu.memory_space<vmem>>, vector<32x32xbf16>
    %cst_22 = arith.constant dense<0.000000e+00> : vector<2x32xf32>
    %51 = tpu.matmul %38, %50, %cst_22 {dimension_numbers = #tpu.dot_dimension_numbers<[1], [0], [0], [1], [0, 0, 1, 1], [], []>} : vector<2x32xbf16>, vector<32x32xbf16>, vector<2x32xf32> -> vector<2x32xf32>
    %c0_23 = arith.constant 0 : index
    %c0_24 = arith.constant 0 : index
    %52 = vector.load %arg8[%c0_23, %c0_24] : memref<1x32xf32, #tpu.memory_space<vmem>>, vector<1x32xf32>
    %53 = vector.broadcast %52 : vector<1x32xf32> to vector<2x32xf32>
    %54 = arith.addf %51, %53 : vector<2x32xf32>
    %cst_25 = arith.constant 0.353553385 : f32
    %55 = vector.broadcast %cst_25 : f32 to vector<2x32xf32>
    %56 = arith.mulf %54, %55 : vector<2x32xf32>
    %57 = vector.extract_strided_slice %44 {offsets = [0, 0], sizes = [32, 32], strides = [1, 1]} : vector<34x32xf32> to vector<32x32xf32>
    %58 = vector.shape_cast %57 : vector<32x32xf32> to vector<2x16x32xf32>
    %59 = vector.extract_strided_slice %44 {offsets = [32, 0], sizes = [2, 32], strides = [1, 1]} : vector<34x32xf32> to vector<2x32xf32>
    %60 = vector.extract_strided_slice %49 {offsets = [0, 0], sizes = [32, 32], strides = [1, 1]} : vector<34x32xf32> to vector<32x32xf32>
    %61 = vector.shape_cast %60 : vector<32x32xf32> to vector<2x16x32xf32>
    %62 = vector.extract_strided_slice %49 {offsets = [32, 0], sizes = [2, 32], strides = [1, 1]} : vector<34x32xf32> to vector<2x32xf32>
    %63 = vector.shape_cast %56 : vector<2x32xf32> to vector<2x1x32xf32>
    %64 = vector.broadcast %63 : vector<2x1x32xf32> to vector<2x16x32xf32>
    %65 = arith.mulf %58, %64 : vector<2x16x32xf32>
    %66 = arith.truncf %65 : vector<2x16x32xf32> to vector<2x16x32xbf16>
    %67 = arith.mulf %59, %56 : vector<2x32xf32>
    %68 = arith.truncf %67 : vector<2x32xf32> to vector<2x32xbf16>
    %69 = vector.shape_cast %66 : vector<2x16x32xbf16> to vector<32x32xbf16>
    %cst_26 = arith.constant dense<0.000000e+00> : vector<32x4xf32>
    %70 = tpu.matmul %69, %11, %cst_26 {dimension_numbers = #tpu.dot_dimension_numbers<[1], [0], [0], [1], [0, 0, 1, 1], [], []>} : vector<32x32xbf16>, vector<32x4xbf16>, vector<32x4xf32> -> vector<32x4xf32>
    %71 = vector.shape_cast %70 : vector<32x4xf32> to vector<2x16x4xf32>
    %cst_27 = arith.constant dense<0.000000e+00> : vector<2x4xf32>
    %72 = tpu.matmul %68, %11, %cst_27 {dimension_numbers = #tpu.dot_dimension_numbers<[1], [0], [0], [1], [0, 0, 1, 1], [], []>} : vector<2x32xbf16>, vector<32x4xbf16>, vector<2x4xf32> -> vector<2x4xf32>
    %73 = tpu.iota {dimensions = array<i32: 1>} : vector<2x16x4xi32>
    %c16_i32 = arith.constant 16 : i32
    %74 = vector.broadcast %c16_i32 : i32 to vector<2x16x4xi32>
    %75 = arith.cmpi slt, %73, %74 : vector<2x16x4xi32>
    %cst_28 = arith.constant -1.000000e+30 : f32
    %76 = vector.broadcast %cst_28 : f32 to vector<2x16x4xf32>
    %77 = arith.select %75, %71, %76 : vector<2x16x4xi1>, vector<2x16x4xf32>
    %cst_29 = arith.constant dense<0xFF800000> : vector<2x4xf32>
    %78 = vector.multi_reduction <maximumf>, %77, %cst_29 [1] : vector<2x16x4xf32> to vector<2x4xf32>
    %79 = arith.maximumf %78, %72 : vector<2x4xf32>
    %80 = vector.shape_cast %79 : vector<2x4xf32> to vector<2x1x4xf32>
    %81 = vector.broadcast %80 : vector<2x1x4xf32> to vector<2x16x4xf32>
    %82 = arith.subf %77, %81 : vector<2x16x4xf32>
    %83 = math.exp %82 : vector<2x16x4xf32>
    %84 = arith.subf %72, %79 : vector<2x4xf32>
    %85 = math.exp %84 : vector<2x4xf32>
    %cst_30 = arith.constant dense<0.000000e+00> : vector<2x4xf32>
    %86 = vector.multi_reduction <add>, %83, %cst_30 [1] : vector<2x16x4xf32> to vector<2x4xf32>
    %87 = arith.addf %85, %86 : vector<2x4xf32>
    %88 = tpu.reciprocal %87 {approx = true} : vector<2x4xf32> -> vector<2x4xf32>
    %89 = vector.shape_cast %88 : vector<2x4xf32> to vector<2x1x4xf32>
    %90 = vector.broadcast %89 : vector<2x1x4xf32> to vector<2x16x4xf32>
    %91 = arith.mulf %83, %90 : vector<2x16x4xf32>
    %92 = arith.truncf %91 : vector<2x16x4xf32> to vector<2x16x4xbf16>
    %93 = arith.mulf %85, %88 : vector<2x4xf32>
    %94 = arith.truncf %93 : vector<2x4xf32> to vector<2x4xbf16>
    %95 = vector.shape_cast %92 : vector<2x16x4xbf16> to vector<32x4xbf16>
    %cst_31 = arith.constant dense<0.000000e+00> : vector<32x32xf32>
    %96 = tpu.matmul %95, %23, %cst_31 {dimension_numbers = #tpu.dot_dimension_numbers<[1], [0], [0], [1], [0, 0, 1, 1], [], []>} : vector<32x4xbf16>, vector<4x32xbf16>, vector<32x32xf32> -> vector<32x32xf32>
    %97 = vector.shape_cast %96 : vector<32x32xf32> to vector<2x16x32xf32>
    %cst_32 = arith.constant dense<0.000000e+00> : vector<2x32xf32>
    %98 = tpu.matmul %94, %23, %cst_32 {dimension_numbers = #tpu.dot_dimension_numbers<[1], [0], [0], [1], [0, 0, 1, 1], [], []>} : vector<2x4xbf16>, vector<4x32xbf16>, vector<2x32xf32> -> vector<2x32xf32>
    %99 = arith.mulf %97, %61 : vector<2x16x32xf32>
    %cst_33 = arith.constant dense<0.000000e+00> : vector<2x32xf32>
    %100 = vector.multi_reduction <add>, %99, %cst_33 [1] : vector<2x16x32xf32> to vector<2x32xf32>
    %101 = arith.mulf %98, %62 : vector<2x32xf32>
    %102 = arith.addf %100, %101 : vector<2x32xf32>
    %103 = arith.truncf %102 : vector<2x32xf32> to vector<2x32xbf16>
    %c0_34 = arith.constant 0 : index
    %c0_35 = arith.constant 0 : index
    %104 = vector.load %arg7[%c0_34, %c0_35] : memref<32x64xbf16, #tpu.memory_space<vmem>>, vector<32x64xbf16>
    %cst_36 = arith.constant dense<0.000000e+00> : vector<2x64xf32>
    %105 = tpu.matmul %103, %104, %cst_36 {dimension_numbers = #tpu.dot_dimension_numbers<[1], [0], [0], [1], [0, 0, 1, 1], [], []>} : vector<2x32xbf16>, vector<32x64xbf16>, vector<2x64xf32> -> vector<2x64xf32>
    %c0_37 = arith.constant 0 : index
    %c0_38 = arith.constant 0 : index
    %106 = vector.load %arg11[%c0_37, %c0_38] : memref<1x64xf32, #tpu.memory_space<vmem>>, vector<1x64xf32>
    %107 = vector.broadcast %106 : vector<1x64xf32> to vector<2x64xf32>
    %108 = arith.addf %105, %107 : vector<2x64xf32>
    %c0_39 = arith.constant 0 : index
    %c0_40 = arith.constant 0 : index
    %109 = vector.load %arg12[%c0_39, %c0_40] : memref<2x64xf32, #tpu.memory_space<vmem>>, vector<2x64xf32>
    tpu.vector_store %arg12[%c0_39, %c0_40], %108 {strides = array<i32>} : memref<2x64xf32, #tpu.memory_space<vmem>>, vector<2x64xf32>,
    return
  }
  func.func @transform_0(%arg0: i32) -> (i32, i32, i32) {
    %c0_i32 = arith.constant 0 : i32
    %c0_i32_0 = arith.constant 0 : i32
    %c0_i32_1 = arith.constant 0 : i32
    return %arg0, %c0_i32, %c0_i32_0 : i32, i32, i32
  }
  func.func @transform_1(%arg0: i32) -> (i32, i32) {
    %c0_i32 = arith.constant 0 : i32
    %c0_i32_0 = arith.constant 0 : i32
    %c0_i32_1 = arith.constant 0 : i32
    return %c0_i32, %c0_i32_0 : i32, i32
  }
  func.func @transform_2(%arg0: i32) -> (i32, i32) {
    %c0_i32 = arith.constant 0 : i32
    %c0_i32_0 = arith.constant 0 : i32
    %c0_i32_1 = arith.constant 0 : i32
    return %c0_i32, %c0_i32_0 : i32, i32
  }
  func.func @transform_3(%arg0: i32) -> (i32, i32) {
    %c0_i32 = arith.constant 0 : i32
    %c0_i32_0 = arith.constant 0 : i32
    %c0_i32_1 = arith.constant 0 : i32
    return %c0_i32, %c0_i32_0 : i32, i32
  }
  func.func @transform_4(%arg0: i32) -> (i32, i32) {
    %c0_i32 = arith.constant 0 : i32
    %c0_i32_0 = arith.constant 0 : i32
    %c0_i32_1 = arith.constant 0 : i32
    return %c0_i32, %c0_i32_0 : i32, i32
  }
  func.func @transform_5(%arg0: i32) -> (i32, i32) {
    %c0_i32 = arith.constant 0 : i32
    %c0_i32_0 = arith.constant 0 : i32
    %c0_i32_1 = arith.constant 0 : i32
    return %c0_i32, %c0_i32_0 : i32, i32
  }
  func.func @transform_6(%arg0: i32) -> (i32, i32) {
    %c0_i32 = arith.constant 0 : i32
    %c0_i32_0 = arith.constant 0 : i32
    %c0_i32_1 = arith.constant 0 : i32
    return %c0_i32, %c0_i32_0 : i32, i32
  }
  func.func @transform_7(%arg0: i32) -> (i32, i32) {
    %c0_i32 = arith.constant 0 : i32
    %c0_i32_0 = arith.constant 0 : i32
    %c0_i32_1 = arith.constant 0 : i32
    return %c0_i32, %c0_i32_0 : i32, i32
  }
  func.func @transform_8(%arg0: i32) -> (i32, i32) {
    %c0_i32 = arith.constant 0 : i32
    %c0_i32_0 = arith.constant 0 : i32
    %c0_i32_1 = arith.constant 0 : i32
    return %c0_i32, %c0_i32_0 : i32, i32
  }
  func.func @transform_9(%arg0: i32) -> (i32, i32) {
    %c0_i32 = arith.constant 0 : i32
    %c0_i32_0 = arith.constant 0 : i32
    %c0_i32_1 = arith.constant 0 : i32
    return %c0_i32, %c0_i32_0 : i32, i32
  }
  func.func @transform_10(%arg0: i32) -> (i32, i32) {
    %c0_i32 = arith.constant 0 : i32
    %c0_i32_0 = arith.constant 0 : i32
    %c0_i32_1 = arith.constant 0 : i32
    return %c0_i32, %c0_i32_0 : i32, i32
  }
  func.func @transform_11(%arg0: i32) -> (i32, i32) {
    %c0_i32 = arith.constant 0 : i32
    %c0_i32_0 = arith.constant 0 : i32
    return %arg0, %c0_i32 : i32, i32
  }
}

</mosaic_0001>

<bundles_post_ra>
// kernel: tpu_custom_call.1
= control target key start
LH: loop header
LB: loop body
LE: loop exit
PB: predicated region body
PF: predicated region fallthrough
CT: control target
= control target key end

     0   :  { %16 = vsyncpa [#allocation3], 0  ;;  %s1541_s0 = inlined_call_operand.hbm [shape: bf16[2,16,32], index: 0, kind: input, shape index: {}]   ;;  %s1542_s1 = inlined_call_operand.vmem [shape: f32[1,32], index: 1, kind: input, shape index: {}]   ;;  %s1543_s2 = inlined_call_operand.hbm [shape: f32[16,32], index: 2, kind: input, shape index: {}]   ;;  %s1544_s3 = inlined_call_operand.hbm [shape: bf16[32,32], index: 3, kind: input, shape index: {}]   ;;  %s1545_s4 = inlined_call_operand.hbm [shape: bf16[32,32], index: 4, kind: input, shape index: {}]   ;;  %s1546_s5 = inlined_call_operand.vmem [shape: bf16[32,32], index: 5, kind: input, shape index: {}]   ;;  %s1547_s6 = inlined_call_operand.hbm [shape: bf16[32,64], index: 6, kind: input, shape index: {}]   ;;  %s1548_s7 = inlined_call_operand.vmem [shape: f32[1,32], index: 7, kind: input, shape index: {}]   ;;  %s1549_s8 = inlined_call_operand.vmem [shape: f32[1,32], index: 8, kind: input, shape index: {}]   ;;  %s1550_s9 = inlined_call_operand.vmem [shape: f32[1,32], index: 9, kind: input, shape index: {}]   ;;  %s1551_s10 = inlined_call_operand.vmem [shape: f32[1,64], index: 10, kind: input, shape index: {}]   ;;  %s1552_s11 = inlined_call_operand.hbm [shape: f32[2,64], index: 11, kind: output, shape index: {}]  }
   0x1   :  { %17 = vsyncpa [#allocation6], 0 }
   0x2   :  { %18 = vsyncpa [#allocation9], 0 }
   0x3   :  { %19 = vsyncpa [#allocation4], 0  ;;  %s1250_s17 = smov [#allocation5]   ;;  %s1110_s21 = scalar_lea.hbm %s1543_s2, 256 }
   0x4   :  { %s39_s18 = sshll.u32 %s1250_s17, 4  ;;  %p1111_p0 = scmp.ne.s32.totalorder %s1543_s2, %s1110_s21  ;;  %s40_s18 = int_to_ptr.vmem [resolvable:$true] %s39_s18 }
   0x5   :  { %p1114_p1 = scmp.lt.u32.totalorder %s1110_s21, %s1543_s2 }
   0x7   :  { %p1116_p2 = pnand %p1114_p1, %p1111_p0 }
   0x9   :  { %1119 = shalt.err (!%p1116_p2)
}
   0xa   :  { %s1120_s26 = scalar_lea.vmem %s40_s18, 256  ;;  %p1125_p4 = scmp.lt.s32.totalorder %s40_s18, %s40_s18 }
   0xb   :  { %p1121_p3 = scmp.ne.s32.totalorder %s40_s18, %s1120_s26  ;;  %p1126_p5 = scmp.lt.s32.totalorder %s1120_s26, %s1120_s26 }
   0xd   :  { %p1127_p6 = por %p1126_p5, %p1125_p4 }
   0xf   :  { %p1128_p7 = pnand %p1127_p6, %p1121_p3 }
  0x11   :  { %1131 = shalt.err (!%p1128_p7)
}
  0x12   :  { %s1251_s27 = smov 128   ;;  %s1252_s28 = smov 8  }
  0x13   :  { %45 = dma.hbm_to_vmem [thread:$0]  %s1543_s2, 256, %s40_s18, [#allocation6], %s1251_s27, %s1251_s27, %s1252_s28  }
  0x14   :  { %s1253_s12 = smov [#allocation8]   ;;  %s1254_s14 = smov [#allocation2]  }
  0x15   :  { %s63_s13 = sshll.u32 %s1253_s12, 4  ;;  %s25_s15 = sshll.u32 %s1254_s14, 4  ;;  %s64_s13 = int_to_ptr.vmem [resolvable:$true] %s63_s13  ;;  %s26_s15 = int_to_ptr.vmem [resolvable:$true] %s25_s15 }
  0x16   :  { %s1132_s19 = scalar_lea.hbm %s1545_s4, 256 }
  0x17   :  { %p1133_p8 = scmp.ne.s32.totalorder %s1545_s4, %s1132_s19  ;;  %p1136_p9 = scmp.lt.u32.totalorder %s1132_s19, %s1545_s4 }
  0x19   :  { %p1138_p10 = pnand %p1136_p9, %p1133_p8 }
  0x1b   :  { %1141 = shalt.err (!%p1138_p10)
}
  0x1c   :  { %s1142_s2 = scalar_lea.vmem %s64_s13, 256  ;;  %p1147_p12 = scmp.lt.s32.totalorder %s64_s13, %s64_s13 }
  0x1d   :  { %p1143_p11 = scmp.ne.s32.totalorder %s64_s13, %s1142_s2  ;;  %p1148_p13 = scmp.lt.s32.totalorder %s1142_s2, %s1142_s2 }
  0x1f   :  { %p1149_p0 = por %p1148_p13, %p1147_p12 }
  0x21   :  { %p1150_p1 = pnand %p1149_p0, %p1143_p11 }
  0x23   :  { %1153 = shalt.err (!%p1150_p1)
}
  0x24   :  { %s1255_s18 = smov 64   ;;  %s1256_s24 = smov 4  }
  0x25   :  { %69 = dma.hbm_to_vmem [thread:$0]  %s1545_s4, 256, %s64_s13, [#allocation9], %s1255_s18, %s1255_s18, %s1256_s24  }
  0x26   :  { %s1154_s29 = scalar_lea.hbm %s1541_s0, 256 }
  0x27   :  { %p1155_p2 = scmp.ne.s32.totalorder %s1541_s0, %s1154_s29  ;;  %p1158_p3 = scmp.lt.u32.totalorder %s1154_s29, %s1541_s0 }
  0x29   :  { %p1160_p4 = pnand %p1158_p3, %p1155_p2 }
  0x2b   :  { %1163 = shalt.err (!%p1160_p4)
}
  0x2c   :  { %s1164_s17 = scalar_lea.vmem %s26_s15, 256  ;;  %p1169_p6 = scmp.lt.s32.totalorder %s26_s15, %s26_s15 }
  0x2d   :  { %p1165_p5 = scmp.ne.s32.totalorder %s26_s15, %s1164_s17  ;;  %p1170_p7 = scmp.lt.s32.totalorder %s1164_s17, %s1164_s17 }
  0x2f   :  { %p1171_p8 = por %p1170_p7, %p1169_p6 }
  0x31   :  { %p1172_p9 = pnand %p1171_p8, %p1165_p5 }
  0x33   :  { %1175 = shalt.err (!%p1172_p9)
}
  0x34   :  { %31 = dma.hbm_to_vmem [thread:$0]  %s1541_s0, 256, %s26_s15, [#allocation3], %s1255_s18, %s1255_s18, %s1256_s24  }
  0x35   :  { %s1257_s19 = smov [#allocation7]   ;;  %s1258_s21 = smov [#allocation10]  }
  0x36   :  { %s51_s20 = sshll.u32 %s1257_s19, 4  ;;  %s77_s22 = sshll.u32 %s1258_s21, 4  ;;  %s52_s20 = int_to_ptr.vmem [resolvable:$true] %s51_s20  ;;  %s78_s22 = int_to_ptr.vmem [resolvable:$true] %s77_s22 }
  0x37   :  { %s1176_s25 = scalar_lea.hbm %s1544_s3, 256 }
  0x38   :  { %p1177_p10 = scmp.ne.s32.totalorder %s1544_s3, %s1176_s25  ;;  %p1180_p11 = scmp.lt.u32.totalorder %s1176_s25, %s1544_s3 }
  0x3a   :  { %p1182_p12 = pnand %p1180_p11, %p1177_p10 }
  0x3c   :  { %1185 = shalt.err (!%p1182_p12)
}
  0x3d   :  { %s1186_s0 = scalar_lea.vmem %s52_s20, 256  ;;  %p1191_p0 = scmp.lt.s32.totalorder %s52_s20, %s52_s20 }
  0x3e   :  { %p1187_p13 = scmp.ne.s32.totalorder %s52_s20, %s1186_s0  ;;  %p1192_p1 = scmp.lt.s32.totalorder %s1186_s0, %s1186_s0 }
  0x40   :  { %p1193_p2 = por %p1192_p1, %p1191_p0 }
  0x42   :  { %p1194_p3 = pnand %p1193_p2, %p1187_p13 }
  0x44   :  { %1197 = shalt.err (!%p1194_p3)
}
  0x45   :  { %57 = dma.hbm_to_vmem [thread:$0]  %s1544_s3, 256, %s52_s20, [#allocation6], %s1255_s18, %s1255_s18, %s1256_s24  }
  0x46   :  { %s1198_s16 = scalar_lea.hbm %s1547_s6, 256 }
  0x47   :  { %p1199_p4 = scmp.ne.s32.totalorder %s1547_s6, %s1198_s16  ;;  %p1202_p5 = scmp.lt.u32.totalorder %s1198_s16, %s1547_s6 }
  0x49   :  { %p1204_p6 = pnand %p1202_p5, %p1199_p4 }
  0x4b   :  { %1207 = shalt.err (!%p1204_p6)
}
  0x4c   :  { %s1208_s21 = scalar_lea.vmem %s78_s22, 256  ;;  %p1213_p8 = scmp.lt.s32.totalorder %s78_s22, %s78_s22 }
  0x4d   :  { %p1209_p7 = scmp.ne.s32.totalorder %s78_s22, %s1208_s21  ;;  %p1214_p9 = scmp.lt.s32.totalorder %s1208_s21, %s1208_s21 }
  0x4f   :  { %p1215_p10 = por %p1214_p9, %p1213_p8 }
  0x51   :  { %p1216_p11 = pnand %p1215_p10, %p1209_p7 }
  0x53   :  { %1219 = shalt.err (!%p1216_p11)
}
  0x54   :  { %83 = dma.hbm_to_vmem [thread:$0]  %s1547_s6, 256, %s78_s22, [#allocation9], %s1255_s18, %s1255_s18, %s1256_s24  }
  0x55   :  { %1242 = dma.done.wait [#allocation3], 256  }
  0x56   :  { %1243 = vsyncadd [#allocation3], 4294967040 }
  0x57   :  { %1244 = dma.done.wait [#allocation6], 512  }
  0x58   :  { %1245 = vsyncadd [#allocation6], 4294966784 }
  0x59   :  { %1246 = dma.done.wait [#allocation9], 512  }
  0x5a   :  { %1247 = vsyncadd [#allocation9], 4294966784  ;;  %v1259_v0 = vmov 0.0   ;;  %vm1260_vm0 = vmmov 0   ;;  %v1090_v1 = vld [vmem:[#allocation8] sm:$0xff]   ;;  %v1091_v2 = vld [vmem:[#allocation8 + $0x8] sm:$0xff]   ;;  %v108_v51 = vlaneseq }
  0x5b   :  { %999 = vmatprep.subr.bf16.mxu0 %v1259_v0  ;;  %1003 = vmatprep.mubr.msk.bf16.mxu0 %vm1260_vm0, %v1259_v0  ;;  %v963_v3 = vld [vmem:[#allocation2] sm:$0xff]   ;;  %v155_v4 = vld [vmem:[#allocation5] sm:$0xff]  ;;  %v156_v5 = vld [vmem:[#allocation5 + $0x8] sm:$0xff]  ;;  %vm161_vm1 = vcmask 261120   ;;  %vm200_vm2 = vcmask 1041409   ;;  %s1263_s28 = smov [#allocation11]  }
  0x5c   :  { %1015 = vmatprep.subr.bf16.mxu1 %v1259_v0  ;;  %1019 = vmatprep.mubr.msk.bf16.mxu1 %vm1260_vm0, %v1259_v0  ;;  %v964_v6 = vunpack.c.l.bf16 %v963_v3  ;;  %v965_v7 = vunpack.c.h.bf16 %v963_v3  ;;  %v970_v8 = vld [vmem:[#allocation2 + $0x8] sm:$0xff]   ;;  %v1092_v14 = vld [vmem:[#allocation7] sm:$0xff]   ;;  %v1437_v52 = vshrl.u32 %v108_v51, 7  ;;  %v1439_v53 = vand.u32 127, %v108_v51  ;;  %s911_s29 = sshll.u32 %s1263_s28, 4  ;;  %s912_s29 = int_to_ptr.vmem [resolvable:$true] %s911_s29 }
  0x5d   :  { %1000 = vmatpush3.bf16.msra.mxu0 %v1090_v1  ;;  %v968_v15 = vunpack.c.l.bf16 %v970_v8  ;;  %v969_v16 = vunpack.c.h.bf16 %v970_v8  ;;  %v1093_v25 = vld [vmem:[#allocation7 + $0x8] sm:$0xff]   ;;  %v927_v37 = vld [vmem:[%s1542_s1] ss:$0 sm:$0xff]  ;;  %v1261_v59 = vmov 1.0|1.0   ;;  %s1220_s0 = scalar_lea.vmem %s912_s29, 32  ;;  %p1225_p13 = scmp.lt.s32.totalorder %s912_s29, %s912_s29 }
  0x5e   :  { %1001 = vmatprep.subr.bf16.mxu0 %v1259_v0  ;;  %v157_v9 = vadd.f32 %v964_v6, %v155_v4  ;;  %v158_v10 = vadd.f32 %v965_v7, %v156_v5  ;;  %v162_v11 = vsel %vm161_vm1, %v964_v6, 0.0  ;;  %v163_v12 = vsel %vm161_vm1, %v965_v7, 0.0  ;;  %v1094_v49 = vld [vmem:[%s1546_s5] sm:$0xff]   ;;  %v1095_v50 = vld [vmem:[%s1546_s5 + $0x8] sm:$0xff]   ;;  %p1221_p12 = scmp.ne.s32.totalorder %s912_s29, %s1220_s0  ;;  %p1226_p0 = scmp.lt.s32.totalorder %s1220_s0, %s1220_s0 }
  0x5f   :  { %v164_v13 = vadd.f32 %v163_v12, %v162_v11  ;;  %v171_v19 = vsel %vm161_vm1, %v968_v15, 0.0  ;;  %v159_v20 = vadd.f32 %v968_v15, %v155_v4  ;;  %v160_v21 = vadd.f32 %v969_v16, %v156_v5  ;;  %1016 = vmatpush3.bf16.msra.mxu1 %v1094_v49  ;;  %v940_v12 = vld [vmem:[%s1548_s7] ss:$0 sm:$0xff] }
  0x60   :  { %v191_v17 = vpack.c.bf16 %v158_v10, %v157_v9  ;;  %v172_v22 = vsel %vm161_vm1, %v969_v16, 0.0  ;;  %1017 = vmatprep.subr.bf16.mxu1 %v1259_v0  ;;  %v110_v54 = vadd.s32 8, %v1437_v52  ;;  %v115_v55 = vmul.u32 8, %v1439_v53  ;;  %p1227_p1 = por %p1226_p0, %p1225_p13 }
  0x61   :  { %1002 = vmatpush3.bf16.msra.mxu0 %v1091_v2  ;;  %v165_v18 = vrot.slane %v164_v13, 4  ;;  %v173_v24 = vadd.f32 %v172_v22, %v171_v19  ;;  %v192_v28 = vpack.c.bf16 %v160_v21, %v159_v20  ;;  %v111_v57 = vadd.s32 16, %v1437_v52 }
  0x62   :  { %1031 = vmatprep.subr.bf16.mxu0 %v1259_v0  ;;  %vm116_vm3 = vcmp.ge.s32.totalorder %v1437_v52, %v115_v55  ;;  %v120_v56 = vadd.s32 8, %v115_v55  ;;  %vm117_vm4 = vcmp.ge.s32.totalorder %v110_v54, %v115_v55  ;;  %v112_v58 = vadd.s32 24, %v1437_v52  ;;  %p1228_p2 = pnand %p1227_p1, %p1221_p12 }
  0x63   :  { %v166_v23 = vadd.f32 %v165_v18, %v164_v13  ;;  %v174_v27 = vrot.slane %v173_v24, 4  ;;  %1018 = vmatpush3.bf16.msra.mxu1 %v1095_v50  ;;  %vm118_vm10 = vcmp.ge.s32.totalorder %v111_v57, %v115_v55  ;;  %v1262_v7 = vmov 1966171168  }
  0x64   :  { %1004 = vmatmul.mubr.msk.bf16.vlgmr.msra.gmra.mrb[0].mxu0 %vm161_vm1, %v191_v17  ;;  %vm121_vm5 = vcmp.lt.s32.totalorder %v1437_v52, %v120_v56  ;;  %vm122_vm6 = vcmp.lt.s32.totalorder %v110_v54, %v120_v56  ;;  %vm119_vm11 = vcmp.ge.s32.totalorder %v112_v58, %v115_v55  ;;  %vm123_vm12 = vcmp.lt.s32.totalorder %v111_v57, %v120_v56 }
  0x65   :  { %1032 = vmatpush3.bf16.msra.mxu0 %v1092_v14  ;;  %1007 = vmatprep.mubr.msk.bf16.mxu0 %vm1260_vm0, %v1259_v0  ;;  %v167_v26 = vrot.slane %v166_v23, 2  ;;  %v175_v29 = vadd.f32 %v174_v27, %v173_v24  ;;  %vm125_vm7 = vmand %vm116_vm3, %vm121_vm5  ;;  %vm124_vm13 = vcmp.lt.s32.totalorder %v112_v58, %v120_v56  ;;  %v436_v8 = vunpack.c.l.s4 %v1262_v7 }
  0x66   :  { %1033 = vmatprep.subr.bf16.mxu0 %v1259_v0  ;;  %1020 = vmatmul.mubr.msk.bf16.vlgmr.msra.gmra.mrb[0].mxu1 %vm161_vm1, %v191_v17  ;;  %vm126_vm8 = vmand %vm117_vm4, %vm122_vm6  ;;  %v928_v17 = vld [vmem:[%s1549_s8] ss:$0 sm:$0xff]  ;;  %v139_v55 = vmul.u32 8, %v1437_v52 }
  0x67   :  { %v168_v30 = vadd.f32 %v167_v26, %v166_v23  ;;  %v176_v31 = vrot.slane %v175_v29, 2  ;;  %1023 = vmatprep.mubr.msk.bf16.mxu1 %vm1260_vm0, %v1259_v0  ;;  %vm944_vm9 = vmpackc.low %vm126_vm8, %vm125_vm7  ;;  %v437_v11 = vunpack.c.0.s8 %v436_v8  ;;  %v1463_v23 = vsub.s32 0, %v1437_v52 }
  0x68   :  { %1039 = vmatprep.subr.msk.bf16.mxu1 %vm944_vm9, %v1261_v59  ;;  %vm127_vm14 = vmand %vm118_vm10, %vm123_vm12  ;;  %vm140_vm4 = vcmp.ge.s32.totalorder %v1439_v53, %v139_v55  ;;  %v141_v56 = vadd.s32 8, %v139_v55  ;;  %vm703_vm7 = vcmask 1041408   ;;  %vm579_vm8 = vcmask 31744  }
  0x69   :  { %1034 = vmatpush3.bf16.msra.mxu0 %v1093_v25  ;;  %v169_v32 = vrot.slane %v168_v30, 1  ;;  %v177_v34 = vadd.f32 %v176_v31, %v175_v29  ;;  %1040 = vmatpush3.bf16.msk.msra.mxu1 %vm944_vm9, %v1261_v59  ;;  %vm128_vm15 = vmand %vm119_vm11, %vm124_vm13  ;;  %v1456_v15 = vsub.s32 %v437_v11, %v1437_v52 }
  0x6a   :  { %1047 = vmatprep.subr.bf16.mxu0 %v1259_v0  ;;  %vm946_vm3 = vmpackc.low %vm128_vm15, %vm127_vm14  ;;  %vm142_vm5 = vcmp.lt.s32.totalorder %v1439_v53, %v141_v56 }
  0x6b   :  { %v170_v33 = vadd.f32 %v169_v32, %v168_v30  ;;  %v178_v35 = vrot.slane %v177_v34, 1  ;;  %1041 = vmatprep.subr.msk.bf16.mxu1 %vm946_vm3, %v1261_v59  ;;  %vm143_vm6 = vmand %vm140_vm4, %vm142_vm5 }
  0x6c   :  { %1008 = vmatmul.mubr.msk.bf16.gmra.mrb[4].mxu0 %vm161_vm1, %v192_v28  ;;  %v926_v57 = vsel %vm143_vm6, 1.0, %v1259_v0 }
  0x6d   :  { %1011 = vmatprep.mubr.msk.bf16.mxu0 %vm1260_vm0, %v1259_v0  ;;  %v180_v36 = vmul.f32 0.0625, %v170_v33  ;;  %v179_v38 = vadd.f32 %v178_v35, %v177_v34  ;;  %1042 = vmatpush3.bf16.msk.msra.mxu1 %vm946_vm3, %v1261_v59  ;;  %v146_v58 = vpack.c.bf16 %v926_v57, %v926_v57 }
  0x6e   :  { %1024 = vmatmul.mubr.msk.bf16.gmra.mrb[4].mxu1 %vm161_vm1, %v192_v28 }
  0x6f   :  { %v189_v39 = vadd.f32 %v927_v37, %v180_v36  ;;  %v181_v40 = vmul.f32 0.0625, %v179_v38  ;;  %1027 = vmatprep.mubr.msk.bf16.mxu1 %vm1260_vm0, %v1259_v0  ;;  %1075 = vmatprep.subr.msk.bf16.mxu1 %vm703_vm7, %v146_v58 }
  0x71   :  { %v190_v41 = vadd.f32 %v927_v37, %v181_v40  ;;  %v193_v42 = vpack.c.bf16 %v189_v39, %v189_v39 }
  0x73   :  { %v194_v43 = vpack.c.bf16 %v190_v41, %v190_v41  ;;  %v197_v44 = vunpack.c.l.b16 %v193_v42 }
  0x75   :  { %v198_v45 = vunpack.c.l.b16 %v194_v43 }
  0x77   :  { %v199_v46 = vrot.slane %v198_v45, 7 }
  0x79   :  { %v201_v47 = vsel %vm200_vm2, %v199_v46, %v197_v44 }
  0x7a   :  { %v202_v48 = vpack.c.b16 %v201_v47, %v201_v47 }
  0x7c   :  { %1012 = vmatmul.mubr.msk.bf16.gmra.mrb[8].mxu0 %vm161_vm1, %v202_v48  ;;  %1028 = vmatmul.mubr.msk.bf16.gmra.mrb[8].mxu1 %vm161_vm1, %v202_v48 }
  0x7d   :  { %1035 = vmatprep.mubr.msk.bf16.mxu0 %vm1260_vm0, %v1259_v0 }
  0x84   :  { %1036 = vmatmul.mubr.msk.bf16.vlgmr.msra.gmra.mrb[12].mxu0 %vm161_vm1, %v202_v48 }
  0x85   :  { %1051 = vmatprep.mubr.msk.bf16.mxu0 %vm1260_vm0, %v1259_v0  ;;  %1048 = vmatpush3.bf16.msk.msra.mxu0 %vm944_vm9, %v1261_v59 }
  0x86   :  { %1049 = vmatprep.subr.bf16.mxu0 %v1259_v0 }
  0x89   :  { %1050 = vmatpush3.bf16.msk.msra.mxu0 %vm946_vm3, %v1261_v59  ;;  %v705_v59 = vsel %vm703_vm7, %v146_v58, 0 }
  0x8a   :  { %1061 = vmatprep.subr.bf16.mxu0 %v1259_v0 }
 0x137   :  { %v269_v60 = vpop.f32.mrb[0].mxu0 }
 0x138   :  { %v1005_v61 = vpop.f32.mrb[1].mxu0  ;;  %v270_v28 = vadd.f32 %v928_v17, %v269_v60 }
 0x139   :  { %v272_v62 = vpop.f32.mrb[2].mxu0  ;;  %v1474_v41 = vpop.f32.mrb[0].mxu1 }
 0x13a   :  { %v1006_v63 = vpop.f32.mrb[3].mxu0  ;;  %v273_v29 = vadd.f32 %v928_v17, %v272_v62  ;;  %v1021_v42 = vpop.f32.mrb[1].mxu1 }
 0x13b   :  { %v1476_v43 = vpop.f32.mrb[2].mxu1 }
 0x13c   :  { %v1022_v44 = vpop.f32.mrb[3].mxu1 }
 0x13f   :  { %v277_v1 = vpop.f32.mrb[4].mxu0 }
 0x140   :  { %v1009_v2 = vpop.f32.mrb[5].mxu0  ;;  %v278_v32 = vadd.f32 %v928_v17, %v277_v1 }
 0x141   :  { %v280_v3 = vpop.f32.mrb[6].mxu0  ;;  %v1478_v45 = vpop.f32.mrb[4].mxu1 }
 0x142   :  { %v1010_v4 = vpop.f32.mrb[7].mxu0  ;;  %v281_v33 = vadd.f32 %v928_v17, %v280_v3  ;;  %v1025_v46 = vpop.f32.mrb[5].mxu1 }
 0x143   :  { %v1480_v47 = vpop.f32.mrb[6].mxu1 }
 0x144   :  { %v1026_v48 = vpop.f32.mrb[7].mxu1 }
 0x14f   :  { %v285_v5 = vpop.f32.mrb[8].mxu0  ;;  %v1482_v49 = vpop.f32.mrb[8].mxu1 }
 0x150   :  { %v1013_v6 = vpop.f32.mrb[9].mxu0  ;;  %v286_v19 = vadd.f32 %v928_v17, %v285_v5  ;;  %v1029_v50 = vpop.f32.mrb[9].mxu1 }
 0x151   :  { %v288_v9 = vpop.f32.mrb[10].mxu0  ;;  %v367_v51 = vpop.f32.mrb[10].mxu1 }
 0x152   :  { %v1014_v10 = vpop.f32.mrb[11].mxu0  ;;  %v1030_v54 = vpop.f32.mrb[11].mxu1 }
 0x157   :  { %v427_v13 = vpop.f32.mrb[12].mxu0 }
 0x158   :  { %v428_v14 = vadd.f32 %v940_v12, %v427_v13  ;;  %v1037_v16 = vpop.f32.mrb[13].mxu0 }
 0x159   :  { %v430_v18 = vpop.f32.mrb[14].mxu0 }
 0x15a   :  { %v433_v20 = vmul.f32 0.35355338, %v428_v14  ;;  %v1038_v21 = vpop.f32.mrb[15].mxu0 }
 0x15c   :  { %v441_v22 = vrot.slane %v433_v20, %v1456_v15  ;;  %v473_v24 = vmul.f32 %v433_v20, %v286_v19 }
 0x15e   :  { %v442_v25 = vcombine.high %v441_v22, %v441_v22  ;;  %v449_v26 = vrot.slane %v441_v22, %v1456_v15  ;;  %v474_v27 = vpack.c.bf16 %v473_v24, %v473_v24 }
 0x160   :  { %v456_v30 = vrot.slane %v442_v25, %v1456_v15  ;;  %v460_v31 = vrot.slane %v449_v26, %v1463_v23  ;;  %1052 = vmatmul.mubr.msk.bf16.vlgmr.msra.gmra.mrb[16].mxu0 %vm161_vm1, %v474_v27 }
 0x161   :  { %1063 = vmatprep.mubr.msk.bf16.mxu0 %vm1260_vm0, %v1259_v0  ;;  %1062 = vmatpush3.bf16.msra.mxu0 %v705_v59 }
 0x162   :  { %v464_v34 = vrot.slane %v456_v30, %v1463_v23  ;;  %v467_v35 = vmul.f32 %v460_v31, %v270_v28  ;;  %v468_v36 = vmul.f32 %v460_v31, %v273_v29 }
 0x164   :  { %v469_v37 = vmul.f32 %v464_v34, %v278_v32  ;;  %v470_v38 = vmul.f32 %v464_v34, %v281_v33  ;;  %v471_v39 = vpack.c.bf16 %v468_v36, %v467_v35 }
 0x166   :  { %v472_v40 = vpack.c.bf16 %v470_v38, %v469_v37  ;;  %1043 = vmatprep.mubr.msk.bf16.mxu1 %vm161_vm1, %v471_v39 }
 0x168   :  { %1044 = vmatmul.mubr.msk.bf16.vlgmr.msra.gmra.mrb[12].mxu1 %vm161_vm1, %v472_v40 }
 0x169   :  { %1056 = vmatpush3.bf16.msra.mxu1 %v705_v59 }
 0x16a   :  { %1067 = vmatprep.subr.bf16.mxu1 %v1259_v0 }
 0x233   :  { %v567_v60 = vpop.f32.mrb[16].mxu0 }
 0x234   :  { %v1053_v61 = vpop.f32.mrb[17].mxu0  ;;  %v599_v20 = vrot.slane %v567_v60, 1 }
 0x235   :  { %v570_v62 = vpop.f32.mrb[18].mxu0 }
 0x236   :  { %v1054_v52 = vpop.f32.mrb[19].mxu0 }
 0x23b   :  { %v1045_v63 = vpop.f32.mrb[12].mxu1 }
 0x23c   :  { %v515_v1 = vpop.f32.mrb[13].mxu1  ;;  %v589_v53 = vsel %vm579_vm8, %v1045_v63, -inf }
 0x23d   :  { %v1046_v2 = vpop.f32.mrb[14].mxu1  ;;  %v580_v5 = vsel %vm579_vm8, %v515_v1, -inf }
 0x23e   :  { %v590_v3 = vsel %vm579_vm8, %v1046_v2, -inf  ;;  %v518_v4 = vpop.f32.mrb[15].mxu1 }
 0x23f   :  { %v591_v6 = vmax.f32 %v589_v53, %v590_v3  ;;  %v581_v7 = vsel %vm579_vm8, %v518_v4, -inf }
 0x240   :  { %v582_v8 = vmax.f32 %v580_v5, %v581_v7 }
 0x241   :  { %v592_v9 = vrot.slane %v591_v6, 4 }
 0x242   :  { %v583_v10 = vrot.slane %v582_v8, 4 }
 0x243   :  { %v593_v11 = vmax.f32 %v591_v6, %v592_v9 }
 0x244   :  { %v584_v12 = vmax.f32 %v582_v8, %v583_v10 }
 0x245   :  { %v594_v13 = vrot.slane %v593_v11, 2 }
 0x246   :  { %v585_v14 = vrot.slane %v584_v12, 2 }
 0x247   :  { %v595_v16 = vmax.f32 %v593_v11, %v594_v13 }
 0x248   :  { %v586_v17 = vmax.f32 %v584_v12, %v585_v14 }
 0x249   :  { %v596_v18 = vrot.slane %v595_v16, 1 }
 0x24a   :  { %v587_v19 = vrot.slane %v586_v17, 1 }
 0x24b   :  { %v597_v21 = vmax.f32 %v595_v16, %v596_v18 }
 0x24c   :  { %v588_v22 = vmax.f32 %v586_v17, %v587_v19 }
 0x24d   :  { %v603_v24 = vmax.f32 %v597_v21, %v599_v20 }
 0x24e   :  { %v602_v25 = vmax.f32 %v588_v22, %v567_v60 }
 0x24f   :  { %v611_v26 = vrot.slane %v603_v24, %v1463_v23  ;;  %v626_v27 = vrot.slane %v603_v24, 7  ;;  %v1096_v24 = vld [vmem:[#allocation10] sm:$0xff]  }
 0x250   :  { %v607_v28 = vrot.slane %v602_v25, %v1463_v23 }
 0x251   :  { %v614_v29 = vsub.f32 %v1045_v63, %v611_v26  ;;  %v615_v30 = vsub.f32 %v1046_v2, %v611_v26  ;;  %v627_v31 = vsel %vm200_vm2, %v626_v27, %v602_v25 }
 0x252   :  { %v612_v32 = vsub.f32 %v515_v1, %v607_v28  ;;  %v613_v33 = vsub.f32 %v518_v4, %v607_v28  ;;  %v629_v34 = vsub.f32 %v567_v60, %v627_v31 }
 0x253   :  { %v620_v35 = vmul.f32 1.442695, %v614_v29  ;;  %v622_v36 = vmul.f32 1.442695, %v615_v30 }
 0x254   :  { %v616_v37 = vmul.f32 1.442695, %v612_v32  ;;  %v618_v38 = vmul.f32 1.442695, %v613_v33  ;;  %v630_v56 = vmul.f32 1.442695, %v629_v34 }
 0x255   :  { %1098 = vpow2.f32 %v620_v35 }
 0x256   :  { %1100 = vpow2.f32 %v622_v36 }
 0x257   :  { %1102 = vpow2.f32 %v616_v37 }
 0x258   :  { %1104 = vpow2.f32 %v618_v38 }
 0x259   :  { %1106 = vpow2.f32 %v630_v56 }
 0x25f   :  { %v1099_v39 = vpop.eup %1098 }
 0x260   :  { %v1101_v40 = vpop.eup %1100  ;;  %v641_v42 = vsel %vm579_vm8, %v1099_v39, 0.0 }
 0x261   :  { %v1103_v44 = vpop.eup %1102  ;;  %v642_v46 = vsel %vm579_vm8, %v1101_v40, 0.0 }
 0x262   :  { %v1105_v48 = vpop.eup %1104  ;;  %v643_v50 = vadd.f32 %v642_v46, %v641_v42  ;;  %v632_v51 = vsel %vm579_vm8, %v1103_v44, 0.0 }
 0x263   :  { %v633_v54 = vsel %vm579_vm8, %v1105_v48, 0.0  ;;  %v1107_v4 = vpop.eup %1106 }
 0x264   :  { %v644_v55 = vrot.slane %v643_v50, 4  ;;  %v634_v57 = vadd.f32 %v633_v54, %v632_v51 }
 0x266   :  { %v645_v58 = vadd.f32 %v644_v55, %v643_v50  ;;  %v635_v59 = vrot.slane %v634_v57, 4 }
 0x268   :  { %v646_v60 = vrot.slane %v645_v58, 2  ;;  %v636_v61 = vadd.f32 %v635_v59, %v634_v57 }
 0x26a   :  { %v647_v62 = vadd.f32 %v646_v60, %v645_v58  ;;  %v637_v52 = vrot.slane %v636_v61, 2 }
 0x26c   :  { %v648_v63 = vrot.slane %v647_v62, 1  ;;  %v638_v1 = vadd.f32 %v637_v52, %v636_v61 }
 0x26e   :  { %v649_v2 = vadd.f32 %v648_v63, %v647_v62  ;;  %v639_v53 = vrot.slane %v638_v1, 1 }
 0x270   :  { %v640_v3 = vadd.f32 %v639_v53, %v638_v1 }
 0x272   :  { %v652_v5 = vsel %vm200_vm2, %v649_v2, %v640_v3 }
 0x273   :  { %v654_v6 = vadd.f32 %v1107_v4, %v652_v5 }
 0x275   :  { %1108 = vrcp.f32 %v654_v6 }
 0x27f   :  { %v1109_v7 = vpop.eup %1108 }
 0x280   :  { %v695_v8 = vmul.f32 %v1109_v7, %v1107_v4  ;;  %v663_v9 = vrot.slane %v1109_v7, %v1456_v15  ;;  %v958_v7 = vld [vmem:[%s1551_s10] ss:$0 sm:$0xff] }
 0x282   :  { %v696_v10 = vpack.c.bf16 %v695_v8, %v695_v8  ;;  %v664_v11 = vcombine.high %v663_v9, %v663_v9  ;;  %v671_v12 = vrot.slane %v663_v9, %v1456_v15 }
 0x284   :  { %1064 = vmatmul.mubr.msk.bf16.vlgmr.msra.gmra.mrb[20].mxu0 %vm579_vm8, %v696_v10  ;;  %v682_v13 = vrot.slane %v671_v12, %v1463_v23  ;;  %v678_v14 = vrot.slane %v664_v11, %v1456_v15  ;;  %v1097_v15 = vld [vmem:[#allocation10 + $0x8] sm:$0xff]  }
 0x286   :  { %v689_v16 = vmul.f32 %v1103_v44, %v682_v13  ;;  %v690_v17 = vmul.f32 %v1105_v48, %v682_v13  ;;  %v686_v18 = vrot.slane %v678_v14, %v1463_v23  ;;  %v934_v23 = vld [vmem:[%s1550_s9] ss:$0 sm:$0xff] }
 0x287   :  { %v365_v25 = vadd.f32 %v934_v23, %v1482_v49  ;;  %v357_v31 = vadd.f32 %v934_v23, %v1478_v45  ;;  %v349_v32 = vadd.f32 %v934_v23, %v1474_v41  ;;  %v352_v36 = vadd.f32 %v934_v23, %v1476_v43 }
 0x288   :  { %v693_v19 = vpack.c.bf16 %v690_v17, %v689_v16  ;;  %v691_v20 = vmul.f32 %v1099_v39, %v686_v18  ;;  %v692_v21 = vmul.f32 %v1101_v40, %v686_v18 }
 0x28a   :  { %1057 = vmatprep.mubr.msk.bf16.mxu1 %vm579_vm8, %v693_v19  ;;  %v694_v22 = vpack.c.bf16 %v692_v21, %v691_v20 }
 0x28c   :  { %1058 = vmatmul.mubr.msk.bf16.vlgmr.msra.gmra.mrb[16].mxu1 %vm579_vm8, %v694_v22 }
 0x28d   :  { %1071 = vmatprep.mubr.msk.bf16.mxu1 %vm1260_vm0, %v1259_v0  ;;  %1068 = vmatpush3.bf16.msra.mxu1 %v1096_v24  ;;  %vm903_vm0 = vcmask 517120  }
 0x28e   :  { %1069 = vmatprep.subr.bf16.mxu1 %v1259_v0  ;;  %v360_v0 = vadd.f32 %v934_v23, %v1480_v47 }
 0x291   :  { %1070 = vmatpush3.bf16.msra.mxu1 %v1097_v15 }
 0x357   :  { %v793_v26 = vpop.f32.mrb[20].mxu0 }
 0x358   :  { %v821_v27 = vmul.f32 %v793_v26, %v365_v25  ;;  %v1065_v28 = vpop.f32.mrb[21].mxu0 }
 0x359   :  { %v796_v29 = vpop.f32.mrb[22].mxu0 }
 0x35a   :  { %v1066_v30 = vpop.f32.mrb[23].mxu0  ;;  %v823_v60 = vrot.slane %v821_v27, 1 }
 0x35f   :  { %v1059_v33 = vpop.f32.mrb[16].mxu1 }
 0x360   :  { %v801_v34 = vmul.f32 %v1059_v33, %v357_v31  ;;  %v741_v35 = vpop.f32.mrb[17].mxu1 }
 0x361   :  { %v799_v37 = vmul.f32 %v741_v35, %v349_v32  ;;  %v1060_v38 = vpop.f32.mrb[18].mxu1 }
 0x362   :  { %v802_v39 = vmul.f32 %v1060_v38, %v360_v0  ;;  %v744_v49 = vpop.f32.mrb[19].mxu1  ;;  %v812_v42 = vsel %vm161_vm1, %v801_v34, 0.0 }
 0x363   :  { %v800_v40 = vmul.f32 %v744_v49, %v352_v36  ;;  %v803_v45 = vsel %vm161_vm1, %v799_v37, 0.0 }
 0x364   :  { %v813_v44 = vsel %vm161_vm1, %v802_v39, 0.0 }
 0x365   :  { %v814_v46 = vadd.f32 %v813_v44, %v812_v42  ;;  %v804_v41 = vsel %vm161_vm1, %v800_v40, 0.0 }
 0x366   :  { %v805_v48 = vadd.f32 %v804_v41, %v803_v45 }
 0x367   :  { %v815_v47 = vrot.slane %v814_v46, 4 }
 0x368   :  { %v806_v50 = vrot.slane %v805_v48, 4 }
 0x369   :  { %v816_v51 = vadd.f32 %v815_v47, %v814_v46 }
 0x36a   :  { %v807_v54 = vadd.f32 %v806_v50, %v805_v48 }
 0x36b   :  { %v817_v43 = vrot.slane %v816_v51, 2 }
 0x36c   :  { %v808_v55 = vrot.slane %v807_v54, 2 }
 0x36d   :  { %v818_v56 = vadd.f32 %v817_v43, %v816_v51 }
 0x36e   :  { %v809_v57 = vadd.f32 %v808_v55, %v807_v54 }
 0x36f   :  { %v819_v58 = vrot.slane %v818_v56, 1 }
 0x370   :  { %v810_v59 = vrot.slane %v809_v57, 1 }
 0x371   :  { %v820_v61 = vadd.f32 %v819_v58, %v818_v56 }
 0x372   :  { %v811_v62 = vadd.f32 %v810_v59, %v809_v57 }
 0x373   :  { %v827_v52 = vadd.f32 %v823_v60, %v820_v61 }
 0x374   :  { %v826_v63 = vadd.f32 %v821_v27, %v811_v62 }
 0x375   :  { %v829_v1 = vpack.c.bf16 %v827_v52, %v827_v52 }
 0x376   :  { %v828_v2 = vpack.c.bf16 %v826_v63, %v826_v63 }
 0x377   :  { %v844_v53 = vunpack.c.l.b16 %v829_v1 }
 0x378   :  { %v843_v3 = vunpack.c.l.b16 %v828_v2 }
 0x379   :  { %v845_v4 = vrot.slane %v844_v53, 7 }
 0x37b   :  { %v846_v5 = vsel %vm200_vm2, %v845_v4, %v843_v3 }
 0x37c   :  { %v847_v6 = vpack.c.b16 %v846_v5, %v846_v5 }
 0x37e   :  { %1072 = vmatmul.mubr.msk.bf16.vlgmr.msra.gmra.mrb[20].mxu1 %vm161_vm1, %v847_v6 }
 0x451   :  { %v897_v8 = vpop.f32.mrb[20].mxu1 }
 0x452   :  { %v898_v9 = vadd.f32 %v958_v7, %v897_v8  ;;  %v1073_v10 = vpop.f32.mrb[21].mxu1 }
 0x453   :  { %v900_v11 = vpop.f32.mrb[22].mxu1 }
 0x454   :  { %v1074_v12 = vpop.f32.mrb[23].mxu1  ;;  %904 = vst.msk [vmem:[#allocation11] sm:$0x3] %vm903_vm0, %v898_v9 }
 0x455   :  { %1231 = shalt.err (!%p1228_p2)
}
 0x456   :  { %s1232_s10 = scalar_lea.hbm %s1552_s11, 32 }
 0x457   :  { %p1233_p3 = scmp.ne.s32.totalorder %s1552_s11, %s1232_s10  ;;  %p1236_p4 = scmp.lt.u32.totalorder %s1232_s10, %s1552_s11 }
 0x459   :  { %p1238_p5 = pnand %p1236_p4, %p1233_p3 }
 0x45b   :  { %1241 = shalt.err (!%p1238_p5)
}
 0x45c   :  { %914 = dma.vmem_to_hbm [thread:$0]  %s912_s29, 32, %s1552_s11, [#allocation4]  }
 0x45d   :  { %1248 = dma.done.wait [#allocation4], 32  }
 0x45e   :  { %1249 = vsyncadd [#allocation4], 4294967264 }
 0x45f   :  { %918 = vsyncpa [#allocation3], 1 }
 0x460   :  { %919 = vsyncpa [#allocation6], 1 }
 0x461   :  { %920 = vsyncpa [#allocation9], 1 }
 0x462   :  { %921 = vsyncpa [#allocation4], 1 }

</bundles_post_ra>
